<compile_context>
chip_gen: v5e
topology: v5e:2x2
jax: 0.10.0
libtpu: 0.0.40
codegen_flags: <defaults>
</compile_context>

<pallas_src>
import functools

import jax
import jax.numpy as jnp
from jax.experimental import pallas as pl
from jax.experimental.pallas import tpu as pltpu


def _round_up(x, m):
    return ((x + m - 1) // m) * m


def _supports_bf16_elementwise():
    """bf16 bias-add/tanh only where the VPU/EUP have bf16 paths (v6e/v7x)."""
    try:
        kind = jax.devices()[0].device_kind.lower()
    except Exception:
        return False
    return any(tag in kind for tag in ("v6", "v7", "7x"))


def _choose_tile_b(B, target=2048):
    """Batch tile: big enough to amortize per-step overhead, grid >= 2 for v7x."""
    bp = _round_up(B, 128)
    tile = min(target, bp)
    if bp >= 256:
        tile = min(tile, bp // 2)          # keep both v7x TensorCores busy
    return max(128, (tile // 128) * 128)    # lane-dense (multiple of 128)


# ----------------------------------------------------------------------------
# Parameter packing (done ONCE at init).
# ----------------------------------------------------------------------------
def pack_params(params, fold_latent=True):
    """Fold the latent pair and pack all [W | b] slabs into one f32 buffer.

    Args:
      params: list of (W, b) in PyTorch layout (W: (out, in), b: (out,)) in
              forward order (encoder then decoder); y = x @ W.T + b per layer.
    Returns:
      (packed_buf, layer_meta) where layer_meta is a static tuple of
      (row_offset, out_dim, in_dim, apply_tanh) per fused layer.
    """
    n = len(params)
    # Tanh after every layer except the latent layer (n//2 - 1) and the final
    # reconstruction layer (n - 1) -- matches the nn.Sequential construction.
    tanh_mask = [i != n // 2 - 1 and i != n - 1 for i in range(n)]
    plist = [(jnp.asarray(w, jnp.float32), jnp.asarray(b, jnp.float32))
             for (w, b) in params]

    if fold_latent and n >= 2:
        k = n // 2 - 1  # latent layer; no activation between k and k+1
        (w3, b3), (w4, b4) = plist[k], plist[k + 1]
        wf = w4 @ w3                  # exact fold, done in f32
        bf = w4 @ b3 + b4
        plist = plist[:k] + [(wf, bf)] + plist[k + 2:]
        tanh_mask = tanh_mask[:k] + [tanh_mask[k + 1]] + tanh_mask[k + 2:]

    meta = []
    row = 0
    max_cols = 0
    for (w, _b), act in zip(plist, tanh_mask):
        out_d, in_d = w.shape
        meta.append((row, out_d, in_d, bool(act)))
        row += _round_up(out_d, 8)            # 8-aligned row slabs
        max_cols = max(max_cols, in_d + 1)    # +1 column for the bias

    total_rows = _round_up(max(row, 8), 8)
    cols = _round_up(max_cols, 8)
    buf = jnp.zeros((total_rows, cols), jnp.float32)
    for (off, out_d, in_d, _act), (w, b) in zip(meta, plist):
        buf = buf.at[off:off + out_d, 0:in_d].set(w)
        buf = buf.at[off:off + out_d, in_d].set(b)
    return buf, tuple(meta)


# ----------------------------------------------------------------------------
# Kernel: full encoder+decoder chain in one grid step.
#   x_ref : (tile_b, D)  f32   natural batch-major input tile
#   p_ref : (R, C)       f32   packed [W | b] slabs (resident across the grid)
#   o_ref : (tile_b, D)  f32   reconstruction tile
# Computes, in transposed (features, batch) layout:  h <- act(W @ h + b).
# ----------------------------------------------------------------------------
def _autoencoder_kernel(layer_meta, compute_dtype, elementwise_dtype,
                        x_ref, p_ref, o_ref):
    h = jnp.transpose(x_ref[...])                       # (D, tile_b), XLU, f32
    for (off, out_d, in_d, act) in layer_meta:
        w = p_ref[pl.ds(off, out_d), pl.ds(0, in_d)].astype(compute_dtype)
        b = p_ref[pl.ds(off, out_d), pl.ds(in_d, 1)].astype(elementwise_dtype)
        h = jnp.dot(w, h.astype(compute_dtype),
                    preferred_element_type=jnp.float32)  # MXU, f32 accum
        h = h.astype(elementwise_dtype) + b
        if act:
            h = jnp.tanh(h)
    o_ref[...] = jnp.transpose(h.astype(o_ref.dtype))    # back to (tile_b, D)


def compression_forward_packed(x, packed, layer_meta, *, tile_b=None,
                               use_bf16=True, elementwise_bf16=None):
    """Autoencoder forward (reconstruction) with pre-packed parameters.

    Args:
      x: (B, input_dim) float32.
      packed, layer_meta: output of pack_params().
      tile_b: batch tile (multiple of 128); auto-chosen if None.
      use_bf16: feed bf16 operands to the MXU (f32 accumulation).
      elementwise_bf16: bias/tanh in bf16; auto (v6e/v7x only) if None.
    Returns:
      (B, input_dim) reconstruction, dtype of x.
    """
    B, D = x.shape
    assert layer_meta[0][2] == D and layer_meta[-1][1] == D
    out_dtype = x.dtype

    compute_dtype = jnp.bfloat16 if use_bf16 else jnp.float32
    if elementwise_bf16 is None:
        elementwise_bf16 = use_bf16 and _supports_bf16_elementwise()
    elementwise_dtype = (jnp.bfloat16 if (use_bf16 and elementwise_bf16)
                         else jnp.float32)

    if tile_b is None:
        tile_b = _choose_tile_b(B)
    assert tile_b % 128 == 0, "tile_b must be a multiple of 128 (lane-dense)"

    # Only pad when the batch doesn't divide the tile (no-op in common cases).
    bp = pl.cdiv(B, tile_b) * tile_b
    xp = x if bp == B else jnp.pad(x, ((0, bp - B), (0, 0)))

    kernel = functools.partial(_autoencoder_kernel, layer_meta,
                               compute_dtype, elementwise_dtype)

    flops = 2 * bp * sum(o * i for (_, o, i, _) in layer_meta)
    transcendentals = bp * sum(o for (_, o, _, a) in layer_meta if a)
    bytes_accessed = (xp.size * xp.dtype.itemsize
                      + bp * D * jnp.dtype(out_dtype).itemsize
                      + packed.size * packed.dtype.itemsize)

    out = pl.pallas_call(
        kernel,
        out_shape=jax.ShapeDtypeStruct((bp, D), out_dtype),
        grid_spec=pltpu.PrefetchScalarGridSpec(
            num_scalar_prefetch=0,
            grid=(bp // tile_b,),
            in_specs=[
                pl.BlockSpec((tile_b, D), lambda i: (i, 0)),      # activations
                pl.BlockSpec(packed.shape, lambda i: (0, 0)),     # resident params
            ],
            out_specs=pl.BlockSpec((tile_b, D), lambda i: (i, 0)),
        ),
        compiler_params=pltpu.CompilerParams(
            dimension_semantics=("parallel",),
        ),
        cost_estimate=pl.CostEstimate(flops=flops,
                                      transcendentals=transcendentals,
                                      bytes_accessed=bytes_accessed),
    )(xp, packed)

    return out if bp == B else out[:B]


def compression_network_forward(x, params, *, fold_latent=True, **kwargs):
    """Convenience wrapper: pack params and run the kernel."""
    packed, meta = pack_params(params, fold_latent=fold_latent)
    return compression_forward_packed(x, packed, meta, **kwargs)


# ----------------------------------------------------------------------------
# Parameter construction (PyTorch nn.Linear layout, uniform +-1/sqrt(fan_in))
# and a pure-JAX reference forward.
# ----------------------------------------------------------------------------
def make_params(key, input_dim, latent_dim=2, hidden_dims=(60, 30, 10)):
    dims = [input_dim] + list(hidden_dims) + [latent_dim]        # encoder
    dims += list(reversed(hidden_dims)) + [input_dim]            # decoder
    params = []
    for i in range(len(dims) - 1):
        fan_in, fan_out = dims[i], dims[i + 1]
        key, kw, kb = jax.random.split(key, 3)
        bound = 1.0 / float(fan_in) ** 0.5
        w = jax.random.uniform(kw, (fan_out, fan_in), jnp.float32, -bound, bound)
        b = jax.random.uniform(kb, (fan_out,), jnp.float32, -bound, bound)
        params.append((w, b))
    return params


def reference_forward(x, params):
    n = len(params)
    h = x
    for i, (w, b) in enumerate(params):
        h = h @ w.T + b
        if i != n // 2 - 1 and i != n - 1:
            h = jnp.tanh(h)
    return h


def reconstruction_loss(x, x_reconstructed):
    # nn.MSELoss equivalent (plain JAX; trivial reduction, no kernel needed).
    return jnp.mean((x - x_reconstructed) ** 2)


if __name__ == "__main__":
    key = jax.random.PRNGKey(0)
    input_dim = 32
    batch = 512          # auto tile = 256 -> grid of 2 (both v7x TCs busy)

    kx, kp = jax.random.split(key)
    x = jax.random.normal(kx, (batch, input_dim), jnp.float32)
    params = make_params(kp, input_dim, latent_dim=2, hidden_dims=(60, 30, 10))

    ref = reference_forward(x, params)

    # Pack the (folded) parameters once, at init.
    packed, meta = pack_params(params, fold_latent=True)

    # f32 path (tight tolerance; only the latent fold re-associates sums).
    out_f32 = compression_forward_packed(x, packed, meta, use_bf16=False)
    out_f32 = jax.block_until_ready(out_f32)
    assert out_f32.shape == (batch, input_dim)
    assert jnp.allclose(out_f32, ref, atol=1e-4, rtol=1e-4), "f32 mismatch vs ref"

    # bf16-MXU path (bf16 bias/tanh auto-enabled only on v6e/v7x).
    out = compression_forward_packed(x, packed, meta, use_bf16=True)
    out = jax.block_until_ready(out)
    assert out.shape == (batch, input_dim)
    assert jnp.allclose(out, ref, atol=5e-2, rtol=5e-2), "bf16 mismatch vs ref"

    _ = jax.block_until_ready(reconstruction_loss(x, out))

    print("KERNEL_OK")
</pallas_src>

<mosaic_0001>
module attributes {stable_mosaic.version = 11 : i64} {
  func.func @_autoencoder_kernel(%arg0: i32, %arg1: memref<256x32xf32, #tpu.memory_space<vmem>>, %arg2: memref<256x64xf32, #tpu.memory_space<vmem>>, %arg3: memref<256x32xf32, #tpu.memory_space<vmem>>) attributes {dimension_semantics = [#tpu.dimension_semantics<parallel>], iteration_bounds = array<i64: 2>, scalar_prefetch = 0 : i64, scratch_operands = 0 : i64, tpu.core_type = #tpu.core_type<tc>, window_params = [{transform_indices = @transform_0, window_bounds = array<i64: 256, 32>}, {pipeline_mode = #tpu.pipeline_mode<synchronous>, transform_indices = @transform_1, window_bounds = array<i64: 256, 64>}, {transform_indices = @transform_2, window_bounds = array<i64: 256, 32>}]} {
    %c0 = arith.constant 0 : index
    %c0_0 = arith.constant 0 : index
    %0 = vector.load %arg1[%c0, %c0_0] : memref<256x32xf32, #tpu.memory_space<vmem>>, vector<256x32xf32>
    %1 = tpu.transpose %0, [1, 0] : vector<256x32xf32> -> vector<32x256xf32>
    %c0_1 = arith.constant 0 : index
    %c0_2 = arith.constant 0 : index
    %2 = vector.load %arg2[%c0_1, %c0_2] : memref<256x64xf32, #tpu.memory_space<vmem>>, vector<60x32xf32>
    %c0_3 = arith.constant 0 : index
    %c32 = arith.constant 32 : index
    %3 = vector.load %arg2[%c0_3, %c32] : memref<256x64xf32, #tpu.memory_space<vmem>>, vector<60x1xf32>
    %cst = arith.constant dense<0.000000e+00> : vector<60x256xf32>
    %4 = tpu.matmul %2, %1, %cst {dimension_numbers = #tpu.dot_dimension_numbers<[1], [0], [0], [1], [0, 0, 1, 1], [], []>} : vector<60x32xf32>, vector<32x256xf32>, vector<60x256xf32> -> vector<60x256xf32>
    %5 = vector.broadcast %3 : vector<60x1xf32> to vector<60x256xf32>
    %6 = arith.addf %4, %5 : vector<60x256xf32>
    %7 = math.tanh %6 : vector<60x256xf32>
    %c64 = arith.constant 64 : index
    %c0_4 = arith.constant 0 : index
    %8 = vector.load %arg2[%c64, %c0_4] : memref<256x64xf32, #tpu.memory_space<vmem>>, vector<30x60xf32>
    %c64_5 = arith.constant 64 : index
    %c60 = arith.constant 60 : index
    %9 = vector.load %arg2[%c64_5, %c60] : memref<256x64xf32, #tpu.memory_space<vmem>>, vector<30x1xf32>
    %cst_6 = arith.constant dense<0.000000e+00> : vector<30x256xf32>
    %10 = tpu.matmul %8, %7, %cst_6 {dimension_numbers = #tpu.dot_dimension_numbers<[1], [0], [0], [1], [0, 0, 1, 1], [], []>} : vector<30x60xf32>, vector<60x256xf32>, vector<30x256xf32> -> vector<30x256xf32>
    %11 = vector.broadcast %9 : vector<30x1xf32> to vector<30x256xf32>
    %12 = arith.addf %10, %11 : vector<30x256xf32>
    %13 = math.tanh %12 : vector<30x256xf32>
    %c96 = arith.constant 96 : index
    %c0_7 = arith.constant 0 : index
    %14 = vector.load %arg2[%c96, %c0_7] : memref<256x64xf32, #tpu.memory_space<vmem>>, vector<10x30xf32>
    %c96_8 = arith.constant 96 : index
    %c30 = arith.constant 30 : index
    %15 = vector.load %arg2[%c96_8, %c30] : memref<256x64xf32, #tpu.memory_space<vmem>>, vector<10x1xf32>
    %cst_9 = arith.constant dense<0.000000e+00> : vector<10x256xf32>
    %16 = tpu.matmul %14, %13, %cst_9 {dimension_numbers = #tpu.dot_dimension_numbers<[1], [0], [0], [1], [0, 0, 1, 1], [], []>} : vector<10x30xf32>, vector<30x256xf32>, vector<10x256xf32> -> vector<10x256xf32>
    %17 = vector.broadcast %15 : vector<10x1xf32> to vector<10x256xf32>
    %18 = arith.addf %16, %17 : vector<10x256xf32>
    %19 = math.tanh %18 : vector<10x256xf32>
    %c112 = arith.constant 112 : index
    %c0_10 = arith.constant 0 : index
    %20 = vector.load %arg2[%c112, %c0_10] : memref<256x64xf32, #tpu.memory_space<vmem>>, vector<10x10xf32>
    %c112_11 = arith.constant 112 : index
    %c10 = arith.constant 10 : index
    %21 = vector.load %arg2[%c112_11, %c10] : memref<256x64xf32, #tpu.memory_space<vmem>>, vector<10x1xf32>
    %cst_12 = arith.constant dense<0.000000e+00> : vector<10x256xf32>
    %22 = tpu.matmul %20, %19, %cst_12 {dimension_numbers = #tpu.dot_dimension_numbers<[1], [0], [0], [1], [0, 0, 1, 1], [], []>} : vector<10x10xf32>, vector<10x256xf32>, vector<10x256xf32> -> vector<10x256xf32>
    %23 = vector.broadcast %21 : vector<10x1xf32> to vector<10x256xf32>
    %24 = arith.addf %22, %23 : vector<10x256xf32>
    %25 = math.tanh %24 : vector<10x256xf32>
    %c128 = arith.constant 128 : index
    %c0_13 = arith.constant 0 : index
    %26 = vector.load %arg2[%c128, %c0_13] : memref<256x64xf32, #tpu.memory_space<vmem>>, vector<30x10xf32>
    %c128_14 = arith.constant 128 : index
    %c10_15 = arith.constant 10 : index
    %27 = vector.load %arg2[%c128_14, %c10_15] : memref<256x64xf32, #tpu.memory_space<vmem>>, vector<30x1xf32>
    %cst_16 = arith.constant dense<0.000000e+00> : vector<30x256xf32>
    %28 = tpu.matmul %26, %25, %cst_16 {dimension_numbers = #tpu.dot_dimension_numbers<[1], [0], [0], [1], [0, 0, 1, 1], [], []>} : vector<30x10xf32>, vector<10x256xf32>, vector<30x256xf32> -> vector<30x256xf32>
    %29 = vector.broadcast %27 : vector<30x1xf32> to vector<30x256xf32>
    %30 = arith.addf %28, %29 : vector<30x256xf32>
    %31 = math.tanh %30 : vector<30x256xf32>
    %c160 = arith.constant 160 : index
    %c0_17 = arith.constant 0 : index
    %32 = vector.load %arg2[%c160, %c0_17] : memref<256x64xf32, #tpu.memory_space<vmem>>, vector<60x30xf32>
    %c160_18 = arith.constant 160 : index
    %c30_19 = arith.constant 30 : index
    %33 = vector.load %arg2[%c160_18, %c30_19] : memref<256x64xf32, #tpu.memory_space<vmem>>, vector<60x1xf32>
    %cst_20 = arith.constant dense<0.000000e+00> : vector<60x256xf32>
    %34 = tpu.matmul %32, %31, %cst_20 {dimension_numbers = #tpu.dot_dimension_numbers<[1], [0], [0], [1], [0, 0, 1, 1], [], []>} : vector<60x30xf32>, vector<30x256xf32>, vector<60x256xf32> -> vector<60x256xf32>
    %35 = vector.broadcast %33 : vector<60x1xf32> to vector<60x256xf32>
    %36 = arith.addf %34, %35 : vector<60x256xf32>
    %37 = math.tanh %36 : vector<60x256xf32>
    %c224 = arith.constant 224 : index
    %c0_21 = arith.constant 0 : index
    %38 = vector.load %arg2[%c224, %c0_21] : memref<256x64xf32, #tpu.memory_space<vmem>>, vector<32x60xf32>
    %c224_22 = arith.constant 224 : index
    %c60_23 = arith.constant 60 : index
    %39 = vector.load %arg2[%c224_22, %c60_23] : memref<256x64xf32, #tpu.memory_space<vmem>>, vector<32x1xf32>
    %cst_24 = arith.constant dense<0.000000e+00> : vector<32x256xf32>
    %40 = tpu.matmul %38, %37, %cst_24 {dimension_numbers = #tpu.dot_dimension_numbers<[1], [0], [0], [1], [0, 0, 1, 1], [], []>} : vector<32x60xf32>, vector<60x256xf32>, vector<32x256xf32> -> vector<32x256xf32>
    %41 = vector.broadcast %39 : vector<32x1xf32> to vector<32x256xf32>
    %42 = arith.addf %40, %41 : vector<32x256xf32>
    %43 = tpu.transpose %42, [1, 0] : vector<32x256xf32> -> vector<256x32xf32>
    %c0_25 = arith.constant 0 : index
    %c0_26 = arith.constant 0 : index
    %44 = vector.load %arg3[%c0_25, %c0_26] : memref<256x32xf32, #tpu.memory_space<vmem>>, vector<256x32xf32>
    tpu.vector_store %arg3[%c0_25, %c0_26], %43 {strides = array<i32>} : memref<256x32xf32, #tpu.memory_space<vmem>>, vector<256x32xf32>,
    return
  }
  func.func @transform_0(%arg0: i32) -> (i32, i32) {
    %c0_i32 = arith.constant 0 : i32
    %c0_i32_0 = arith.constant 0 : i32
    return %arg0, %c0_i32 : i32, i32
  }
  func.func @transform_1(%arg0: i32) -> (i32, i32) {
    %c0_i32 = arith.constant 0 : i32
    %c0_i32_0 = arith.constant 0 : i32
    %c0_i32_1 = arith.constant 0 : i32
    return %c0_i32, %c0_i32_0 : i32, i32
  }
  func.func @transform_2(%arg0: i32) -> (i32, i32) {
    %c0_i32 = arith.constant 0 : i32
    %c0_i32_0 = arith.constant 0 : i32
    return %arg0, %c0_i32 : i32, i32
  }
}

</mosaic_0001>

<bundles_post_ra>
// kernel: tpu_custom_call.1
= control target key start
LH: loop header
LB: loop body
LE: loop exit
PB: predicated region body
PF: predicated region fallthrough
CT: control target
= control target key end

     0   :  { %s1500_s9 = smov 0   ;;  %s1878_s0 = inlined_call_operand.vmem [shape: f32[512,32], index: 0, kind: input, shape index: {}]   ;;  %s1879_s1 = inlined_call_operand.vmem [shape: f32[256,64], index: 1, kind: input, shape index: {}]   ;;  %s1880_s2 = inlined_call_operand.vmem [shape: f32[512,32], index: 2, kind: output, shape index: {}]  }
   0x1 LB: > { %s1212_s10 = sadd.s32 4294967295, %s1479_s9   ;;  %p1216_p0 = scmp.ge.s32.totalorder %s1479_s9, 1  ;;  %s1479_s9 = sphi %s1500_s9, %s12_s9  }
   0x2   : > { %p113_p1 = scmp.lt.s32.totalorder %s1479_s9, 3 }
   0x4   : > { %p114_p2 = pnand %p1216_p0, %p113_p1 }
   0x5   : > { %s1217_s11 = sshll.u32 (!%p114_p2), %s1212_s10, 5 }
   0x6   : > { %117 = sbr.rel (%p114_p2) target bundleno = 1559 (0x617), region = 28  ;;  %p136_p3 = scmp.lt.s32.totalorder (!%p114_p2), %s1217_s11, 63 }
   0xb   : > { %s1882_s11 = smov (!%p136_p3, %s1217_s11), 63  ;;  %vm227_vm0 = vcmask 261120   ;;  %v1549_v14 = vld [vmem:[%s1879_s1 + $0x28] sm:$0xff]  ;;  %v1481_v17 = vmov 32   ;;  %v186_v20 = vld [vmem:[%s1879_s1 + $0x38] sm:$0xf] }
   0xc   : > { %s1218_s12 = sshll.u32 %s1882_s11, 3  ;;  %1345 = vset.pattern.permute.xlu1 %v1481_v17  ;;  %1344 = vset.pattern.permute.xlu0 %v1481_v17  ;;  %v183_v21 = vld [vmem:[%s1879_s1 + $0x20] sm:$0xff]  ;;  %v185_v26 = vld [vmem:[%s1879_s1 + $0x30] sm:$0xff]  ;;  %v180_v32 = vld [vmem:[%s1879_s1 + $0x8] sm:$0xff]  ;;  %vm471_vm1 = vcmask 1043456   ;;  %vm462_vm2 = vcmask 490496  }
   0xd   : > { %s1516_s15 = scalar_lea.vmem %s1878_s0, %s1218_s12  ;;  %214 = vperm.xlu1 %1345, %v1549_v14   ;;  %1346 = vset.pattern.permute.xlu2 %v1481_v17  ;;  %v179_v29 = vld [vmem:[%s1879_s1] sm:$0xff]  ;;  %v182_v33 = vld [vmem:[%s1879_s1 + $0x18] sm:$0xff]  ;;  %v181_v38 = vld [vmem:[%s1879_s1 + $0x10] sm:$0xff]  ;;  %vm561_vm3 = vcmask 1045504   ;;  %vm556_vm4 = vcmask 244736   ;;  %vm635_vm5 = vcmask 1041408   ;;  %s1809_s4 = scalar_lea.vmem %s1880_s2, %s1218_s12 }
   0xe   : > { %v162_v0 = vld [vmem:[%s1516_s15 + $0x78] sm:$0xff]  ;;  %v161_v2 = vld [vmem:[%s1516_s15 + $0x70] sm:$0xff]  ;;  %v160_v4 = vld [vmem:[%s1516_s15 + $0x68] sm:$0xff]  ;;  %224 = vperm.xlu0 %1344, %v186_v20   ;;  %204 = vperm.xlu2 %1346, %v182_v33   ;;  %vm630_vm6 = vcmask 80896  }
   0xf   : > { %v178_v1 = vld [vmem:[%s1516_s15 + $0xf8] sm:$0xff]  ;;  %1221 = vmatpush.xpose.msk.msra.mxu0 %vm227_vm0, %v162_v0  ;;  %v177_v3 = vld [vmem:[%s1516_s15 + $0xf0] sm:$0xff]  ;;  %v176_v5 = vld [vmem:[%s1516_s15 + $0xe8] sm:$0xff] }
  0x10   : > { %1245 = vmatpush.xpose.msk.msra.mxu1 %vm227_vm0, %v178_v1  ;;  %v159_v6 = vld [vmem:[%s1516_s15 + $0x60] sm:$0xff]  ;;  %v158_v8 = vld [vmem:[%s1516_s15 + $0x58] sm:$0xff]  ;;  %v157_v10 = vld [vmem:[%s1516_s15 + $0x50] sm:$0xff] }
  0x11   : > { %v175_v7 = vld [vmem:[%s1516_s15 + $0xe0] sm:$0xff]  ;;  %v174_v9 = vld [vmem:[%s1516_s15 + $0xd8] sm:$0xff]  ;;  %v173_v11 = vld [vmem:[%s1516_s15 + $0xd0] sm:$0xff] }
  0x12   : > { %v156_v12 = vld [vmem:[%s1516_s15 + $0x48] sm:$0xff]  ;;  %v155_v15 = vld [vmem:[%s1516_s15 + $0x40] sm:$0xff]  ;;  %v154_v18 = vld [vmem:[%s1516_s15 + $0x38] sm:$0xff] }
  0x13   : > { %1222 = vmatpush.xpose.msk.msra.mxu0 %vm227_vm0, %v161_v2  ;;  %v172_v13 = vld [vmem:[%s1516_s15 + $0xc8] sm:$0xff]  ;;  %v171_v16 = vld [vmem:[%s1516_s15 + $0xc0] sm:$0xff]  ;;  %v170_v19 = vld [vmem:[%s1516_s15 + $0xb8] sm:$0xff] }
  0x14   : > { %1246 = vmatpush.xpose.msk.msra.mxu1 %vm227_vm0, %v177_v3  ;;  %v153_v22 = vld [vmem:[%s1516_s15 + $0x30] sm:$0xff]  ;;  %v152_v24 = vld [vmem:[%s1516_s15 + $0x28] sm:$0xff]  ;;  %v151_v27 = vld [vmem:[%s1516_s15 + $0x20] sm:$0xff] }
  0x15   : > { %v169_v23 = vld [vmem:[%s1516_s15 + $0xb0] sm:$0xff]  ;;  %209 = vperm.xlu1 %1345, %v183_v21   ;;  %v168_v25 = vld [vmem:[%s1516_s15 + $0xa8] sm:$0xff]  ;;  %v167_v28 = vld [vmem:[%s1516_s15 + $0xa0] sm:$0xff] }
  0x16   : > { %219 = vperm.xlu0 %1344, %v185_v26   ;;  %v150_v30 = vld [vmem:[%s1516_s15 + $0x18] sm:$0xff]  ;;  %v149_v34 = vld [vmem:[%s1516_s15 + $0x10] sm:$0xff]  ;;  %v148_v36 = vld [vmem:[%s1516_s15 + $0x8] sm:$0xff]  ;;  %199 = vperm.xlu2 %1346, %v181_v38  }
  0x17   : > { %1223 = vmatpush.xpose.msk.msra.mxu0 %vm227_vm0, %v160_v4  ;;  %v166_v31 = vld [vmem:[%s1516_s15 + $0x98] sm:$0xff]  ;;  %v165_v35 = vld [vmem:[%s1516_s15 + $0x90] sm:$0xff]  ;;  %v164_v37 = vld [vmem:[%s1516_s15 + $0x88] sm:$0xff] }
  0x18   : > { %1247 = vmatpush.xpose.msk.msra.mxu1 %vm227_vm0, %v176_v5  ;;  %v147_v39 = vld [vmem:[%s1516_s15] sm:$0xff]  ;;  %v439_v17 = vld [vmem:[%s1879_s1 + $0x48] sm:$0xff] }
  0x19   : > { %v163_v40 = vld [vmem:[%s1516_s15 + $0x80] sm:$0xff] }
  0x1b   : > { %1224 = vmatpush.xpose.msk.msra.mxu0 %vm227_vm0, %v159_v6 }
  0x1c   : > { %1248 = vmatpush.xpose.msk.msra.mxu1 %vm227_vm0, %v175_v7 }
  0x1d   : > { %189 = vperm.xlu1 %1345, %v179_v29  }
  0x1e   : > { %194 = vperm.xlu0 %1344, %v180_v32  }
  0x1f   : > { %1225 = vmatpush.xpose.msk.msra.mxu0 %vm227_vm0, %v158_v8 }
  0x20   : > { %1249 = vmatpush.xpose.msk.msra.mxu1 %vm227_vm0, %v174_v9 }
  0x23   : > { %1226 = vmatpush.xpose.msk.msra.mxu0 %vm227_vm0, %v157_v10 }
  0x24   : > { %1250 = vmatpush.xpose.msk.msra.mxu1 %vm227_vm0, %v173_v11 }
  0x27   : > { %1227 = vmatpush.xpose.msk.msra.mxu0 %vm227_vm0, %v156_v12 }
  0x28   : > { %1251 = vmatpush.xpose.msk.msra.mxu1 %vm227_vm0, %v172_v13 }
  0x2b   : > { %1228 = vmatpush.xpose.msk.msra.mxu0 %vm227_vm0, %v155_v15 }
  0x2c   : > { %1252 = vmatpush.xpose.msk.msra.mxu1 %vm227_vm0, %v171_v16 }
  0x2f   : > { %1229 = vmatpush.xpose.msk.msra.mxu0 %vm227_vm0, %v154_v18  ;;  %v1482_v18 = vmov 60  }
  0x30   : > { %1253 = vmatpush.xpose.msk.msra.mxu1 %vm227_vm0, %v170_v19  ;;  %1349 = vset.pattern.permute.xlu1 %v1482_v18 }
  0x31   : > { %449 = vperm.xlu1 %1349, %v439_v17   ;;  %1347 = vset.pattern.permute.xlu2 %v1482_v18 }
  0x32   : > { %1348 = vset.pattern.permute.xlu0 %v1482_v18 }
  0x33   : > { %1230 = vmatpush.xpose.msk.msra.mxu0 %vm227_vm0, %v153_v22 }
  0x34   : > { %1254 = vmatpush.xpose.msk.msra.mxu1 %vm227_vm0, %v169_v23 }
  0x37   : > { %1231 = vmatpush.xpose.msk.msra.mxu0 %vm227_vm0, %v152_v24 }
  0x38   : > { %1255 = vmatpush.xpose.msk.msra.mxu1 %vm227_vm0, %v168_v25  ;;  %v441_v25 = vld [vmem:[%s1879_s1 + $0x58] sm:$0x3f] }
  0x39   : > { %459 = vperm.xlu2 %1347, %v441_v25  }
  0x3b   : > { %1232 = vmatpush.xpose.msk.msra.mxu0 %vm227_vm0, %v151_v27  ;;  %v440_v27 = vld [vmem:[%s1879_s1 + $0x50] sm:$0xff] }
  0x3c   : > { %1256 = vmatpush.xpose.msk.msra.mxu1 %vm227_vm0, %v167_v28  ;;  %454 = vperm.xlu0 %1348, %v440_v27  }
  0x3f   : > { %1233 = vmatpush.xpose.msk.msra.mxu0 %vm227_vm0, %v150_v30 }
  0x40   : > { %1257 = vmatpush.xpose.msk.msra.mxu1 %vm227_vm0, %v166_v31 }
  0x43   : > { %1234 = vmatpush.xpose.msk.msra.mxu0 %vm227_vm0, %v149_v34 }
  0x44   : > { %1258 = vmatpush.xpose.msk.msra.mxu1 %vm227_vm0, %v165_v35  ;;  %v438_v35 = vld [vmem:[%s1879_s1 + $0x40] sm:$0xff] }
  0x45   : > { %444 = vperm.xlu2 %1347, %v438_v35  }
  0x47   : > { %1235 = vmatpush.xpose.msk.msra.mxu0 %vm227_vm0, %v148_v36 }
  0x48   : > { %1259 = vmatpush.xpose.msk.msra.mxu1 %vm227_vm0, %v164_v37 }
  0x4b   : > { %1236 = vmatpush.xpose.msk.msra.mxu0 %vm227_vm0, %v147_v39 }
  0x4c   : > { %1260 = vmatpush.xpose.msk.msra.mxu1 %vm227_vm0, %v163_v40 }
  0x4e   : > { %1237 = vmatmul.msk.f32.vlgmr.msra.gmra.mxu0 %vm227_vm0, %v179_v29 }
  0x4f   : > { %1261 = vmatmul.msk.f32.vlgmr.msra.gmra.mxu1 %vm227_vm0, %v179_v29 }
  0x56   : > { %1238 = vmatmul.msk.f32.gmra.mxu0 %vm227_vm0, %v180_v32 }
  0x57   : > { %1262 = vmatmul.msk.f32.gmra.mxu1 %vm227_vm0, %v180_v32 }
  0x5e   : > { %1239 = vmatmul.msk.f32.gmra.mxu0 %vm227_vm0, %v181_v38 }
  0x5f   : > { %1263 = vmatmul.msk.f32.gmra.mxu1 %vm227_vm0, %v181_v38 }
  0x66   : > { %1240 = vmatmul.msk.f32.gmra.mxu0 %vm227_vm0, %v182_v33 }
  0x67   : > { %1264 = vmatmul.msk.f32.gmra.mxu1 %vm227_vm0, %v182_v33 }
  0x68   : > { %v205_v57 = vpop.permute.xlu2 %204 }
  0x6e   : > { %1241 = vmatmul.msk.f32.gmra.mxu0 %vm227_vm0, %v183_v21 }
  0x6f   : > { %1265 = vmatmul.msk.f32.gmra.mxu1 %vm227_vm0, %v183_v21 }
  0x70   : > { %v200_v6 = vpop.permute.xlu2 %199 }
  0x76   : > { %1242 = vmatmul.msk.f32.gmra.mxu0 %vm227_vm0, %v1549_v14 }
  0x77   : > { %1266 = vmatmul.msk.f32.gmra.mxu1 %vm227_vm0, %v1549_v14 }
  0x7e   : > { %1243 = vmatmul.msk.f32.gmra.mxu0 %vm227_vm0, %v185_v26 }
  0x7f   : > { %1267 = vmatmul.msk.f32.gmra.mxu1 %vm227_vm0, %v185_v26  ;;  %v215_v54 = vpop.permute.xlu1 %214 }
  0x80   : > { %v225_v53 = vpop.permute.xlu0 %224 }
  0x86   : > { %1244 = vmatmul.msk.f32.gmra.mxu0 %vm227_vm0, %v186_v20 }
  0x87   : > { %1268 = vmatmul.msk.f32.gmra.mxu1 %vm227_vm0, %v186_v20  ;;  %v210_v61 = vpop.permute.xlu1 %209 }
  0x88   : > { %v220_v58 = vpop.permute.xlu0 %219 }
  0x8f   : > { %v190_v15 = vpop.permute.xlu1 %189 }
  0x90   : > { %v195_v10 = vpop.permute.xlu0 %194 }
  0xcb   : > { %v357_v41 = vpop.f32.mrf.mxu0 }
  0xcc   : > { %v1627_v42 = vpop.f32.mrf.mxu1  ;;  %v358_v22 = vadd.f32 %v357_v41, %v190_v15 }
  0xcd   : > { %v399_v24 = vadd.f32 %v1627_v42, %v190_v15 }
  0xd3   : > { %v360_v43 = vpop.f32.mrf.mxu0 }
  0xd4   : > { %v401_v44 = vpop.f32.mrf.mxu1  ;;  %v361_v16 = vadd.f32 %v360_v43, %v195_v10  ;;  %v460_v43 = vpop.permute.xlu2 %459 }
  0xd5   : > { %v402_v20 = vadd.f32 %v401_v44, %v195_v10 }
  0xdb   : > { %v363_v45 = vpop.f32.mrf.mxu0 }
  0xdc   : > { %v404_v46 = vpop.f32.mrf.mxu1  ;;  %v364_v11 = vadd.f32 %v363_v45, %v200_v6  ;;  %v544_v45 = vld [vmem:[%s1879_s1 + $0x60] sm:$0xff] }
  0xdd   : > { %v405_v13 = vadd.f32 %v404_v46, %v200_v6  ;;  %v545_v46 = vld [vmem:[%s1879_s1 + $0x68] sm:$0x3]  ;;  %v619_v6 = vld [vmem:[%s1879_s1 + $0x78] sm:$0x3] }
  0xe3   : > { %v366_v47 = vpop.f32.mrf.mxu0 }
  0xe4   : > { %v407_v48 = vpop.f32.mrf.mxu1  ;;  %v367_v7 = vadd.f32 %v366_v47, %v205_v57  ;;  %v1483_v47 = vmov 30  }
  0xe5   : > { %v408_v8 = vadd.f32 %v407_v48, %v205_v57  ;;  %1350 = vset.pattern.permute.xlu1 %v1483_v47  ;;  %1351 = vset.pattern.permute.xlu2 %v1483_v47  ;;  %v455_v48 = vpop.permute.xlu0 %454 }
  0xe6   : > { %553 = vperm.xlu1 %1350, %v545_v46   ;;  %548 = vperm.xlu2 %1351, %v544_v45  }
  0xeb   : > { %v369_v49 = vpop.f32.mrf.mxu0 }
  0xec   : > { %v410_v50 = vpop.f32.mrf.mxu1  ;;  %v370_v4 = vadd.f32 %v369_v49, %v210_v61 }
  0xed   : > { %v411_v5 = vadd.f32 %v410_v50, %v210_v61 }
  0xf3   : > { %v372_v51 = vpop.f32.mrf.mxu0 }
  0xf4   : > { %v413_v52 = vpop.f32.mrf.mxu1  ;;  %v373_v2 = vadd.f32 %v372_v51, %v215_v54  ;;  %v450_v51 = vpop.permute.xlu1 %449 }
  0xf5   : > { %v414_v3 = vadd.f32 %v413_v52, %v215_v54 }
  0xfb   : > { %v375_v55 = vpop.f32.mrf.mxu0 }
  0xfc   : > { %v416_v56 = vpop.f32.mrf.mxu1  ;;  %v376_v62 = vadd.f32 %v375_v55, %v220_v58 }
  0xfd   : > { %v417_v1 = vadd.f32 %v416_v56, %v220_v58  ;;  %v445_v56 = vpop.permute.xlu2 %444 }
 0x103   : > { %v378_v59 = vpop.f32.mrf.mxu0 }
 0x104   : > { %v419_v60 = vpop.f32.mrf.mxu1  ;;  %v379_v63 = vadd.f32 %v378_v59, %v225_v53 }
 0x105   : > { %v420_v0 = vadd.f32 %v419_v60, %v225_v53 }
 0x106   : > { %1361 = vtanh.f32 %v379_v63 }
 0x107   : > { %1363 = vtanh.f32 %v420_v0 }
 0x108   : > { %1365 = vtanh.f32 %v376_v62 }
 0x109   : > { %1367 = vtanh.f32 %v417_v1 }
 0x10a   : > { %1369 = vtanh.f32 %v373_v2 }
 0x10b   : > { %1371 = vtanh.f32 %v414_v3 }
 0x10c   : > { %v1362_v9 = vpop.eup %1361  ;;  %1373 = vtanh.f32 %v370_v4 }
 0x10d   : > { %v1364_v12 = vpop.eup %1363  ;;  %1375 = vtanh.f32 %v411_v5  ;;  %1269 = vmatpush.msk.msra.mxu2 %vm471_vm1, %v1362_v9  ;;  %v618_v5 = vld [vmem:[%s1879_s1 + $0x70] sm:$0xff] }
 0x10e   : > { %v1366_v14 = vpop.eup %1365  ;;  %1377 = vtanh.f32 %v367_v7  ;;  %1274 = vmatpush.msk.msra.mxu3 %vm471_vm1, %v1364_v12  ;;  %v1484_v7 = vmov 10   ;;  %v694_v12 = vld [vmem:[%s1879_s1 + $0x90] sm:$0xff] }
 0x10f   : > { %v1368_v19 = vpop.eup %1367  ;;  %1379 = vtanh.f32 %v408_v8  ;;  %487 = vmatpush.msra.mxu2 %v1366_v14  ;;  %1352 = vset.pattern.permute.xlu0 %v1484_v7 }
 0x110   : > { %v1370_v21 = vpop.eup %1369  ;;  %1381 = vtanh.f32 %v364_v11  ;;  %516 = vmatpush.msra.mxu3 %v1368_v19  ;;  %1353 = vset.pattern.permute.xlu1 %v1484_v7  ;;  %v692_v11 = vld [vmem:[%s1879_s1 + $0x80] sm:$0xff] }
 0x111   : > { %v1372_v23 = vpop.eup %1371  ;;  %1383 = vtanh.f32 %v405_v13  ;;  %488 = vmatpush.msra.mxu2 %v1370_v21  ;;  %627 = vperm.xlu0 %1352, %v619_v6  }
 0x112   : > { %v1374_v26 = vpop.eup %1373  ;;  %1385 = vtanh.f32 %v361_v16  ;;  %517 = vmatpush.msra.mxu3 %v1372_v23  ;;  %622 = vperm.xlu1 %1353, %v618_v5  }
 0x113   : > { %v1376_v28 = vpop.eup %1375  ;;  %1387 = vtanh.f32 %v402_v20  ;;  %489 = vmatpush.msra.mxu2 %v1374_v26  ;;  %1354 = vset.pattern.permute.xlu2 %v1484_v7 }
 0x114   : > { %v1378_v29 = vpop.eup %1377  ;;  %1389 = vtanh.f32 %v358_v22  ;;  %518 = vmatpush.msra.mxu3 %v1376_v28 }
 0x115   : > { %v1380_v30 = vpop.eup %1379  ;;  %1391 = vtanh.f32 %v399_v24  ;;  %490 = vmatpush.msra.mxu2 %v1378_v29  ;;  %v695_v29 = vld [vmem:[%s1879_s1 + $0x98] sm:$0x3f] }
 0x116   : > { %v1382_v31 = vpop.eup %1381  ;;  %519 = vmatpush.msra.mxu3 %v1380_v30  ;;  %713 = vperm.xlu2 %1354, %v695_v29  }
 0x117   : > { %v1384_v32 = vpop.eup %1383  ;;  %491 = vmatpush.msra.mxu2 %v1382_v31 }
 0x118   : > { %v1386_v33 = vpop.eup %1385  ;;  %520 = vmatpush.msra.mxu3 %v1384_v32 }
 0x119   : > { %v1388_v34 = vpop.eup %1387  ;;  %492 = vmatpush.msra.mxu2 %v1386_v33  ;;  %698 = vperm.xlu0 %1352, %v692_v11  }
 0x11a   : > { %v1390_v36 = vpop.eup %1389  ;;  %521 = vmatpush.msra.mxu3 %v1388_v34  ;;  %708 = vperm.xlu1 %1353, %v694_v12  }
 0x11b   : > { %v1392_v37 = vpop.eup %1391  ;;  %493 = vmatpush.msra.mxu2 %v1390_v36  ;;  %v693_v36 = vld [vmem:[%s1879_s1 + $0x88] sm:$0xff] }
 0x11c   : > { %522 = vmatpush.msra.mxu3 %v1392_v37  ;;  %1270 = vmatmul.msk.f32.vlgmr.msra.gmra.mxu2 %vm462_vm2, %v438_v35 }
 0x11d   : > { %1275 = vmatmul.msk.f32.vlgmr.msra.gmra.mxu3 %vm462_vm2, %v438_v35 }
 0x11e   : > { %703 = vperm.xlu2 %1354, %v693_v36  }
 0x121   : > { %1357 = vset.pattern.permute.xlu0 %v1483_v47 }
 0x122   : > { %1355 = vset.pattern.permute.xlu1 %v1483_v47 }
 0x124   : > { %1271 = vmatmul.msk.f32.gmra.mxu2 %vm462_vm2, %v439_v17 }
 0x125   : > { %1276 = vmatmul.msk.f32.gmra.mxu3 %vm462_vm2, %v439_v17 }
 0x126   : > { %1356 = vset.pattern.permute.xlu2 %v1483_v47  ;;  %v1709_v47 = vld [vmem:[%s1879_s1 + $0xc8] sm:$0xff] }
 0x127   : > { %831 = vperm.xlu0 %1357, %v1709_v47  }
 0x12c   : > { %1272 = vmatmul.msk.f32.gmra.mxu2 %vm462_vm2, %v440_v27 }
 0x12d   : > { %1277 = vmatmul.msk.f32.gmra.mxu3 %vm462_vm2, %v440_v27 }
 0x134   : > { %1273 = vmatmul.msk.f32.gmra.mxu2 %vm462_vm2, %v441_v25 }
 0x135   : > { %1278 = vmatmul.msk.f32.gmra.mxu3 %vm462_vm2, %v441_v25 }
 0x140   : > { %v549_v10 = vpop.permute.xlu2 %548 }
 0x158   : > { %v554_v14 = vpop.permute.xlu1 %553 }
 0x183   : > { %v628_v30 = vpop.permute.xlu0 %627 }
 0x184   : > { %v623_v27 = vpop.permute.xlu1 %622 }
 0x19f   : > { %v495_v38 = vpop.f32.mrf.mxu2 }
 0x1a0   : > { %v524_v39 = vpop.f32.mrf.mxu3  ;;  %v496_v59 = vadd.f32 %v495_v38, %v445_v56 }
 0x1a1   : > { %v525_v60 = vadd.f32 %v524_v39, %v445_v56 }
 0x1a7   : > { %v498_v40 = vpop.f32.mrf.mxu2 }
 0x1a8   : > { %v527_v41 = vpop.f32.mrf.mxu3  ;;  %v499_v57 = vadd.f32 %v498_v40, %v450_v51 }
 0x1a9   : > { %v528_v58 = vadd.f32 %v527_v41, %v450_v51 }
 0x1af   : > { %v501_v42 = vpop.f32.mrf.mxu2 }
 0x1b0   : > { %v530_v44 = vpop.f32.mrf.mxu3  ;;  %v502_v49 = vadd.f32 %v501_v42, %v455_v48 }
 0x1b1   : > { %v531_v54 = vadd.f32 %v530_v44, %v455_v48 }
 0x1b2   : > { %1393 = vtanh.f32 %v502_v49  ;;  %v709_v49 = vpop.permute.xlu1 %708 }
 0x1b7   : > { %v504_v50 = vpop.f32.mrf.mxu2 }
 0x1b8   : > { %v505_v52 = vadd.f32 %v504_v50, %v460_v43  ;;  %v533_v53 = vpop.f32.mrf.mxu3  ;;  %v1394_v61 = vpop.eup %1393 }
 0x1b9   : > { %v534_v55 = vadd.f32 %v533_v53, %v460_v43 }
 0x1ba   : > { %1395 = vtanh.f32 %v505_v52 }
 0x1bb   : > { %1397 = vtanh.f32 %v534_v55 }
 0x1bc   : > { %1399 = vtanh.f32 %v531_v54 }
 0x1bd   : > { %1401 = vtanh.f32 %v499_v57  ;;  %v796_v57 = vld [vmem:[%s1879_s1 + $0xa0] sm:$0xff] }
 0x1be   : > { %1403 = vtanh.f32 %v528_v58  ;;  %v803_v58 = vld [vmem:[%s1879_s1 + $0xd8] sm:$0xf]  ;;  %806 = vperm.xlu0 %1357, %v796_v57  }
 0x1bf   : > { %1405 = vtanh.f32 %v496_v59  ;;  %841 = vperm.xlu1 %1355, %v803_v58  }
 0x1c0   : > { %v1396_v62 = vpop.eup %1395  ;;  %1407 = vtanh.f32 %v525_v60  ;;  %v699_v60 = vpop.permute.xlu0 %698 }
 0x1c1   : > { %v1398_v63 = vpop.eup %1397  ;;  %1279 = vmatpush.msk.msrb.mxu2 %vm561_vm3, %v1396_v62 }
 0x1c2   : > { %1282 = vmatpush.msk.msrb.mxu3 %vm561_vm3, %v1398_v63  ;;  %v1400_v0 = vpop.eup %1399 }
 0x1c3   : > { %581 = vmatpush.msrb.mxu2 %v1394_v61  ;;  %v1402_v1 = vpop.eup %1401 }
 0x1c4   : > { %604 = vmatpush.msrb.mxu3 %v1400_v0  ;;  %v1404_v2 = vpop.eup %1403 }
 0x1c5   : > { %582 = vmatpush.msrb.mxu2 %v1402_v1  ;;  %v1406_v3 = vpop.eup %1405 }
 0x1c6   : > { %605 = vmatpush.msrb.mxu3 %v1404_v2  ;;  %v1408_v4 = vpop.eup %1407  ;;  %v800_v2 = vld [vmem:[%s1879_s1 + $0xc0] sm:$0xff]  ;;  %1360 = vset.pattern.permute.xlu0 %v1482_v18 }
 0x1c7   : > { %583 = vmatpush.msrb.mxu2 %v1406_v3  ;;  %826 = vperm.xlu1 %1355, %v800_v2  }
 0x1c8   : > { %606 = vmatpush.msrb.mxu3 %v1408_v4  ;;  %1280 = vmatmul.msk.f32.vlgmr.msrb.gmra.mxu2 %vm556_vm4, %v544_v45 }
 0x1c9   : > { %1283 = vmatmul.msk.f32.vlgmr.msrb.gmra.mxu3 %vm556_vm4, %v544_v45  ;;  %v714_v45 = vpop.permute.xlu2 %713 }
 0x1d0   : > { %1281 = vmatmul.msk.f32.gmra.mxu2 %vm556_vm4, %v545_v46 }
 0x1d1   : > { %1284 = vmatmul.msk.f32.gmra.mxu3 %vm556_vm4, %v545_v46  ;;  %v704_v51 = vpop.permute.xlu2 %703 }
 0x24b   : > { %v585_v8 = vpop.f32.mrf.mxu2 }
 0x24c   : > { %v608_v9 = vpop.f32.mrf.mxu3  ;;  %v586_v13 = vadd.f32 %v585_v8, %v549_v10 }
 0x24d   : > { %v609_v19 = vadd.f32 %v608_v9, %v549_v10  ;;  %v798_v9 = vld [vmem:[%s1879_s1 + $0xb0] sm:$0xff] }
 0x24e   : > { %1409 = vtanh.f32 %v586_v13  ;;  %v802_v10 = vld [vmem:[%s1879_s1 + $0xd0] sm:$0xff]  ;;  %816 = vperm.xlu1 %1355, %v798_v9  }
 0x24f   : > { %836 = vperm.xlu2 %1356, %v802_v10  }
 0x253   : > { %v588_v15 = vpop.f32.mrf.mxu2 }
 0x254   : > { %v589_v16 = vadd.f32 %v588_v15, %v554_v14  ;;  %v611_v17 = vpop.f32.mrf.mxu3  ;;  %v1410_v21 = vpop.eup %1409 }
 0x255   : > { %v612_v20 = vadd.f32 %v611_v17, %v554_v14 }
 0x256   : > { %1411 = vtanh.f32 %v589_v16  ;;  %1358 = vset.pattern.permute.xlu1 %v1482_v18 }
 0x257   : > { %1413 = vtanh.f32 %v612_v20 }
 0x258   : > { %1415 = vtanh.f32 %v609_v19 }
 0x25c   : > { %v1412_v22 = vpop.eup %1411 }
 0x25d   : > { %v1414_v23 = vpop.eup %1413  ;;  %1285 = vmatpush.msk.msra.mxu2 %vm635_vm5, %v1412_v22 }
 0x25e   : > { %1288 = vmatpush.msk.msra.mxu3 %vm635_vm5, %v1414_v23  ;;  %v1416_v24 = vpop.eup %1415 }
 0x25f   : > { %657 = vmatpush.msra.mxu2 %v1410_v21 }
 0x260   : > { %680 = vmatpush.msra.mxu3 %v1416_v24  ;;  %1286 = vmatmul.msk.f32.vlgmr.msra.gmra.mxu2 %vm630_vm6, %v618_v5 }
 0x261   : > { %1289 = vmatmul.msk.f32.vlgmr.msra.gmra.mxu3 %vm630_vm6, %v618_v5 }
 0x268   : > { %1287 = vmatmul.msk.f32.gmra.mxu2 %vm630_vm6, %v619_v6 }
 0x269   : > { %1290 = vmatmul.msk.f32.gmra.mxu3 %vm630_vm6, %v619_v6 }
 0x2e3   : > { %v659_v25 = vpop.f32.mrf.mxu2 }
 0x2e4   : > { %v682_v26 = vpop.f32.mrf.mxu3  ;;  %v660_v28 = vadd.f32 %v659_v25, %v623_v27  ;;  %v842_v25 = vpop.permute.xlu1 %841 }
 0x2e5   : > { %v683_v34 = vadd.f32 %v682_v26, %v623_v27  ;;  %v837_v26 = vpop.permute.xlu2 %836 }
 0x2e6   : > { %1417 = vtanh.f32 %v660_v28 }
 0x2eb   : > { %v662_v31 = vpop.f32.mrf.mxu2 }
 0x2ec   : > { %v663_v32 = vadd.f32 %v662_v31, %v628_v30  ;;  %v685_v33 = vpop.f32.mrf.mxu3  ;;  %v1418_v37 = vpop.eup %1417 }
 0x2ed   : > { %v686_v35 = vadd.f32 %v685_v33, %v628_v30  ;;  %v1768_v30 = vld [vmem:[%s1879_s1 + $0xe8] sm:$0xff]  ;;  %v827_v31 = vpop.permute.xlu1 %826 }
 0x2ee   : > { %1419 = vtanh.f32 %v663_v32 }
 0x2ef   : > { %1421 = vtanh.f32 %v686_v35 }
 0x2f0   : > { %1423 = vtanh.f32 %v683_v34  ;;  %v832_v34 = vpop.permute.xlu0 %831 }
 0x2f4   : > { %v1420_v38 = vpop.eup %1419 }
 0x2f5   : > { %v1422_v39 = vpop.eup %1421  ;;  %1291 = vmatpush.msk.msrb.mxu2 %vm635_vm5, %v1420_v38 }
 0x2f6   : > { %1296 = vmatpush.msk.msrb.mxu3 %vm635_vm5, %v1422_v39  ;;  %v1424_v40 = vpop.eup %1423 }
 0x2f7   : > { %745 = vmatpush.msrb.mxu2 %v1418_v37 }
 0x2f8   : > { %774 = vmatpush.msrb.mxu3 %v1424_v40  ;;  %1292 = vmatmul.msk.f32.vlgmr.msrb.gmra.mxu2 %vm630_vm6, %v692_v11  ;;  %v1775_v40 = vld [vmem:[%s1879_s1 + $0xf0] sm:$0xff] }
 0x2f9   : > { %1297 = vmatmul.msk.f32.vlgmr.msrb.gmra.mxu3 %vm630_vm6, %v692_v11  ;;  %v797_v11 = vld [vmem:[%s1879_s1 + $0xa8] sm:$0xff]  ;;  %980 = vperm.xlu0 %1360, %v1775_v40  }
 0x300   : > { %1293 = vmatmul.msk.f32.gmra.mxu2 %vm630_vm6, %v693_v36 }
 0x301   : > { %1298 = vmatmul.msk.f32.gmra.mxu3 %vm630_vm6, %v693_v36 }
 0x308   : > { %1294 = vmatmul.msk.f32.gmra.mxu2 %vm630_vm6, %v694_v12 }
 0x309   : > { %1299 = vmatmul.msk.f32.gmra.mxu3 %vm630_vm6, %v694_v12  ;;  %v799_v12 = vld [vmem:[%s1879_s1 + $0xb8] sm:$0xff] }
 0x30a   : > { %821 = vperm.xlu2 %1356, %v799_v12  }
 0x310   : > { %1295 = vmatmul.msk.f32.gmra.mxu2 %vm630_vm6, %v695_v29 }
 0x311   : > { %1300 = vmatmul.msk.f32.gmra.mxu3 %vm630_vm6, %v695_v29  ;;  %v1763_v29 = vld [vmem:[%s1879_s1 + $0xe0] sm:$0xff] }
 0x312   : > { %811 = vperm.xlu2 %1356, %v797_v11   ;;  %970 = vperm.xlu1 %1358, %v1763_v29  }
 0x31a   : > { %1359 = vset.pattern.permute.xlu2 %v1482_v18 }
 0x31b   : > { %975 = vperm.xlu2 %1359, %v1768_v30  }
 0x364   : > { %v822_v32 = vpop.permute.xlu2 %821 }
 0x37b   : > { %v747_v41 = vpop.f32.mrf.mxu2 }
 0x37c   : > { %v776_v42 = vpop.f32.mrf.mxu3  ;;  %v748_v62 = vadd.f32 %v747_v41, %v699_v60 }
 0x37d   : > { %v777_v63 = vadd.f32 %v776_v42, %v699_v60 }
 0x383   : > { %v750_v43 = vpop.f32.mrf.mxu2 }
 0x384   : > { %v779_v44 = vpop.f32.mrf.mxu3  ;;  %v751_v59 = vadd.f32 %v750_v43, %v704_v51  ;;  %v1781_v43 = vld [vmem:[%s1879_s1 + $0xf8] sm:$0xff] }
 0x385   : > { %v780_v61 = vadd.f32 %v779_v44, %v704_v51  ;;  %985 = vperm.xlu1 %1358, %v1781_v43  }
 0x38b   : > { %v753_v46 = vpop.f32.mrf.mxu2 }
 0x38c   : > { %v782_v48 = vpop.f32.mrf.mxu3  ;;  %v754_v52 = vadd.f32 %v753_v46, %v709_v49  ;;  %v817_v46 = vpop.permute.xlu1 %816 }
 0x38d   : > { %v783_v55 = vadd.f32 %v782_v48, %v709_v49 }
 0x393   : > { %v756_v50 = vpop.f32.mrf.mxu2 }
 0x394   : > { %v757_v53 = vadd.f32 %v756_v50, %v714_v45  ;;  %v785_v54 = vpop.f32.mrf.mxu3  ;;  %v812_v50 = vpop.permute.xlu2 %811 }
 0x395   : > { %v786_v56 = vadd.f32 %v785_v54, %v714_v45 }
 0x396   : > { %1425 = vtanh.f32 %v757_v53 }
 0x397   : > { %1427 = vtanh.f32 %v786_v56 }
 0x398   : > { %1429 = vtanh.f32 %v754_v52 }
 0x399   : > { %1431 = vtanh.f32 %v783_v55  ;;  %v807_v55 = vpop.permute.xlu0 %806 }
 0x39a   : > { %1433 = vtanh.f32 %v751_v59 }
 0x39b   : > { %1435 = vtanh.f32 %v780_v61 }
 0x39c   : > { %v1426_v0 = vpop.eup %1425  ;;  %1437 = vtanh.f32 %v748_v62 }
 0x39d   : > { %v1428_v1 = vpop.eup %1427  ;;  %1439 = vtanh.f32 %v777_v63  ;;  %1301 = vmatpush.msk.msra.mxu2 %vm561_vm3, %v1426_v0 }
 0x39e   : > { %v1430_v3 = vpop.eup %1429  ;;  %1310 = vmatpush.msk.msra.mxu3 %vm561_vm3, %v1428_v1 }
 0x39f   : > { %v1432_v4 = vpop.eup %1431  ;;  %879 = vmatpush.msra.mxu2 %v1430_v3 }
 0x3a0   : > { %v1434_v5 = vpop.eup %1433  ;;  %920 = vmatpush.msra.mxu3 %v1432_v4 }
 0x3a1   : > { %v1436_v6 = vpop.eup %1435  ;;  %880 = vmatpush.msra.mxu2 %v1434_v5 }
 0x3a2   : > { %v1438_v7 = vpop.eup %1437  ;;  %921 = vmatpush.msra.mxu3 %v1436_v6 }
 0x3a3   : > { %v1440_v8 = vpop.eup %1439  ;;  %881 = vmatpush.msra.mxu2 %v1438_v7 }
 0x3a4   : > { %922 = vmatpush.msra.mxu3 %v1440_v8  ;;  %1302 = vmatmul.msk.f32.vlgmr.msra.gmra.mxu2 %vm556_vm4, %v796_v57 }
 0x3a5   : > { %1311 = vmatmul.msk.f32.vlgmr.msra.gmra.mxu3 %vm556_vm4, %v796_v57 }
 0x3ac   : > { %1303 = vmatmul.msk.f32.gmra.mxu2 %vm556_vm4, %v797_v11 }
 0x3ad   : > { %1312 = vmatmul.msk.f32.gmra.mxu3 %vm556_vm4, %v797_v11 }
 0x3b4   : > { %1304 = vmatmul.msk.f32.gmra.mxu2 %vm556_vm4, %v798_v9 }
 0x3b5   : > { %1313 = vmatmul.msk.f32.gmra.mxu3 %vm556_vm4, %v798_v9  ;;  %v971_v9 = vpop.permute.xlu1 %970 }
 0x3bc   : > { %1305 = vmatmul.msk.f32.gmra.mxu2 %vm556_vm4, %v799_v12 }
 0x3bd   : > { %1314 = vmatmul.msk.f32.gmra.mxu3 %vm556_vm4, %v799_v12 }
 0x3c4   : > { %1306 = vmatmul.msk.f32.gmra.mxu2 %vm556_vm4, %v800_v2 }
 0x3c5   : > { %1315 = vmatmul.msk.f32.gmra.mxu3 %vm556_vm4, %v800_v2 }
 0x3cc   : > { %1307 = vmatmul.msk.f32.gmra.mxu2 %vm556_vm4, %v1709_v47 }
 0x3cd   : > { %1316 = vmatmul.msk.f32.gmra.mxu3 %vm556_vm4, %v1709_v47 }
 0x3d4   : > { %1308 = vmatmul.msk.f32.gmra.mxu2 %vm556_vm4, %v802_v10 }
 0x3d5   : > { %1317 = vmatmul.msk.f32.gmra.mxu3 %vm556_vm4, %v802_v10 }
 0x3dc   : > { %1309 = vmatmul.msk.f32.gmra.mxu2 %vm556_vm4, %v803_v58 }
 0x3dd   : > { %1318 = vmatmul.msk.f32.gmra.mxu3 %vm556_vm4, %v803_v58 }
 0x427   : > { %v1756_v13 = vpop.f32.mrf.mxu2 }
 0x428   : > { %v1758_v18 = vpop.f32.mrf.mxu3  ;;  %v884_v60 = vadd.f32 %v1756_v13, %v807_v55 }
 0x429   : > { %v925_v62 = vadd.f32 %v1758_v18, %v807_v55  ;;  %v976_v18 = vpop.permute.xlu2 %975 }
 0x42f   : > { %v886_v14 = vpop.f32.mrf.mxu2 }
 0x430   : > { %v927_v15 = vpop.f32.mrf.mxu3  ;;  %v887_v56 = vadd.f32 %v886_v14, %v812_v50 }
 0x431   : > { %v928_v58 = vadd.f32 %v927_v15, %v812_v50 }
 0x437   : > { %v889_v16 = vpop.f32.mrf.mxu2 }
 0x438   : > { %v930_v17 = vpop.f32.mrf.mxu3  ;;  %v890_v51 = vadd.f32 %v889_v16, %v817_v46 }
 0x439   : > { %v931_v53 = vadd.f32 %v930_v17, %v817_v46 }
 0x43f   : > { %v892_v19 = vpop.f32.mrf.mxu2 }
 0x440   : > { %v933_v20 = vpop.f32.mrf.mxu3  ;;  %v893_v48 = vadd.f32 %v892_v19, %v822_v32  ;;  %v981_v19 = vpop.permute.xlu0 %980 }
 0x441   : > { %v934_v47 = vadd.f32 %v933_v20, %v822_v32 }
 0x447   : > { %v895_v21 = vpop.f32.mrf.mxu2 }
 0x448   : > { %v936_v22 = vpop.f32.mrf.mxu3  ;;  %v896_v44 = vadd.f32 %v895_v21, %v827_v31 }
 0x449   : > { %v937_v45 = vadd.f32 %v936_v22, %v827_v31 }
 0x44f   : > { %v898_v23 = vpop.f32.mrf.mxu2 }
 0x450   : > { %v939_v24 = vpop.f32.mrf.mxu3  ;;  %v899_v41 = vadd.f32 %v898_v23, %v832_v34 }
 0x451   : > { %v940_v42 = vadd.f32 %v939_v24, %v832_v34  ;;  %v986_v24 = vpop.permute.xlu1 %985 }
 0x457   : > { %v901_v27 = vpop.f32.mrf.mxu2 }
 0x458   : > { %v942_v28 = vpop.f32.mrf.mxu3  ;;  %v902_v35 = vadd.f32 %v901_v27, %v837_v26 }
 0x459   : > { %v943_v38 = vadd.f32 %v942_v28, %v837_v26 }
 0x45f   : > { %v904_v33 = vpop.f32.mrf.mxu2 }
 0x460   : > { %v905_v36 = vadd.f32 %v904_v33, %v842_v25  ;;  %v945_v37 = vpop.f32.mrf.mxu3 }
 0x461   : > { %v946_v39 = vadd.f32 %v945_v37, %v842_v25 }
 0x462   : > { %1441 = vtanh.f32 %v905_v36 }
 0x463   : > { %1443 = vtanh.f32 %v946_v39 }
 0x464   : > { %1445 = vtanh.f32 %v902_v35 }
 0x465   : > { %1447 = vtanh.f32 %v943_v38 }
 0x466   : > { %1449 = vtanh.f32 %v899_v41 }
 0x467   : > { %1451 = vtanh.f32 %v940_v42 }
 0x468   : > { %v1442_v49 = vpop.eup %1441  ;;  %1453 = vtanh.f32 %v896_v44 }
 0x469   : > { %v1444_v52 = vpop.eup %1443  ;;  %1455 = vtanh.f32 %v937_v45  ;;  %1319 = vmatpush.msk.msrb.mxu0 %vm471_vm1, %v1442_v49 }
 0x46a   : > { %v1446_v54 = vpop.eup %1445  ;;  %1457 = vtanh.f32 %v893_v48  ;;  %1324 = vmatpush.msk.msrb.mxu1 %vm471_vm1, %v1444_v52 }
 0x46b   : > { %v1448_v57 = vpop.eup %1447  ;;  %1459 = vtanh.f32 %v934_v47  ;;  %1011 = vmatpush.msrb.mxu0 %v1446_v54 }
 0x46c   : > { %v1450_v59 = vpop.eup %1449  ;;  %1461 = vtanh.f32 %v890_v51  ;;  %1040 = vmatpush.msrb.mxu1 %v1448_v57 }
 0x46d   : > { %v1452_v61 = vpop.eup %1451  ;;  %1463 = vtanh.f32 %v931_v53  ;;  %1012 = vmatpush.msrb.mxu0 %v1450_v59 }
 0x46e   : > { %v1454_v63 = vpop.eup %1453  ;;  %1465 = vtanh.f32 %v887_v56  ;;  %1041 = vmatpush.msrb.mxu1 %v1452_v61 }
 0x46f   : > { %v1456_v0 = vpop.eup %1455  ;;  %1467 = vtanh.f32 %v928_v58  ;;  %1013 = vmatpush.msrb.mxu0 %v1454_v63 }
 0x470   : > { %v1458_v1 = vpop.eup %1457  ;;  %1469 = vtanh.f32 %v884_v60  ;;  %1042 = vmatpush.msrb.mxu1 %v1456_v0 }
 0x471   : > { %v1460_v2 = vpop.eup %1459  ;;  %1471 = vtanh.f32 %v925_v62  ;;  %1014 = vmatpush.msrb.mxu0 %v1458_v1 }
 0x472   : > { %v1462_v3 = vpop.eup %1461  ;;  %1043 = vmatpush.msrb.mxu1 %v1460_v2 }
 0x473   : > { %v1464_v4 = vpop.eup %1463  ;;  %1015 = vmatpush.msrb.mxu0 %v1462_v3 }
 0x474   : > { %v1466_v5 = vpop.eup %1465  ;;  %1044 = vmatpush.msrb.mxu1 %v1464_v4 }
 0x475   : > { %v1468_v6 = vpop.eup %1467  ;;  %1016 = vmatpush.msrb.mxu0 %v1466_v5 }
 0x476   : > { %v1470_v7 = vpop.eup %1469  ;;  %1045 = vmatpush.msrb.mxu1 %v1468_v6 }
 0x477   : > { %v1472_v8 = vpop.eup %1471  ;;  %1017 = vmatpush.msrb.mxu0 %v1470_v7 }
 0x478   : > { %1046 = vmatpush.msrb.mxu1 %v1472_v8  ;;  %1320 = vmatmul.msk.f32.vlgmr.msrb.gmra.mxu0 %vm462_vm2, %v1763_v29 }
 0x479   : > { %1325 = vmatmul.msk.f32.vlgmr.msrb.gmra.mxu1 %vm462_vm2, %v1763_v29 }
 0x480   : > { %1321 = vmatmul.msk.f32.gmra.mxu0 %vm462_vm2, %v1768_v30 }
 0x481   : > { %1326 = vmatmul.msk.f32.gmra.mxu1 %vm462_vm2, %v1768_v30 }
 0x488   : > { %1322 = vmatmul.msk.f32.gmra.mxu0 %vm462_vm2, %v1775_v40 }
 0x489   : > { %1327 = vmatmul.msk.f32.gmra.mxu1 %vm462_vm2, %v1775_v40 }
 0x490   : > { %1323 = vmatmul.msk.f32.gmra.mxu0 %vm462_vm2, %v1781_v43 }
 0x491   : > { %1328 = vmatmul.msk.f32.gmra.mxu1 %vm462_vm2, %v1781_v43 }
 0x4f5   : > { %v1019_v10 = vpop.f32.mrf.mxu0 }
 0x4f6   : > { %v1020_v11 = vadd.f32 %v1019_v10, %v971_v9  ;;  %v1048_v12 = vpop.f32.mrf.mxu1 }
 0x4f7   : > { %v1049_v13 = vadd.f32 %v1048_v12, %v971_v9 }
 0x4f8   : > { %1060 = vxpose.xlu2.b32.start [1/4] (short) %v1020_v11, 128 }
 0x4f9   : > { %1092 = vxpose.xlu1.b32.start [1/4] (short) %v1049_v13, 128 }
 0x4fd   : > { %v1022_v14 = vpop.f32.mrf.mxu0 }
 0x4fe   : > { %v1023_v15 = vadd.f32 %v1022_v14, %v976_v18  ;;  %v1051_v16 = vpop.f32.mrf.mxu1 }
 0x4ff   : > { %v1052_v17 = vadd.f32 %v1051_v16, %v976_v18 }
 0x500   : > { %1061 = vxpose.xlu2.b32.cont [2/4] (short) %v1023_v15, 128 }
 0x501   : > { %1093 = vxpose.xlu1.b32.cont [2/4] (short) %v1052_v17, 128 }
 0x505   : > { %v1025_v20 = vpop.f32.mrf.mxu0 }
 0x506   : > { %v1026_v21 = vadd.f32 %v1025_v20, %v981_v19  ;;  %v1054_v22 = vpop.f32.mrf.mxu1 }
 0x507   : > { %v1055_v23 = vadd.f32 %v1054_v22, %v981_v19 }
 0x508   : > { %1062 = vxpose.xlu2.b32.cont [3/4] (short) %v1026_v21, 128 }
 0x509   : > { %1094 = vxpose.xlu1.b32.cont [3/4] (short) %v1055_v23, 128 }
 0x50d   : > { %v1028_v25 = vpop.f32.mrf.mxu0 }
 0x50e   : > { %v1029_v26 = vadd.f32 %v1028_v25, %v986_v24  ;;  %v1057_v27 = vpop.f32.mrf.mxu1 }
 0x50f   : > { %v1058_v28 = vadd.f32 %v1057_v27, %v986_v24 }
 0x510   : > { %1063 = vxpose.xlu2.b32.end [4/4] (short) %v1029_v26, 128 }
 0x511   : > { %1095 = vxpose.xlu1.b32.end [4/4] (short) %v1058_v28, 128 }
 0x591   : > { %v1076_v29 = vpop.trf.xlu2 }
 0x592   : > { %1124 = vst.msk [vmem:[%s1809_s4] sm:$0xff] %vm227_vm0, %v1076_v29 }
 0x599   : > { %v1077_v30 = vpop.trf.xlu2 }
 0x59a   : > { %1125 = vst.msk [vmem:[%s1809_s4 + $0x8] sm:$0xff] %vm227_vm0, %v1077_v30 }
 0x59d   : > { %v1108_v31 = vpop.trf.xlu1 }
 0x59e   : > { %1140 = vst.msk [vmem:[%s1809_s4 + $0x80] sm:$0xff] %vm227_vm0, %v1108_v31 }
 0x5a1   : > { %v1078_v32 = vpop.trf.xlu2 }
 0x5a2   : > { %1126 = vst.msk [vmem:[%s1809_s4 + $0x10] sm:$0xff] %vm227_vm0, %v1078_v32 }
 0x5a5   : > { %v1109_v33 = vpop.trf.xlu1 }
 0x5a6   : > { %1141 = vst.msk [vmem:[%s1809_s4 + $0x88] sm:$0xff] %vm227_vm0, %v1109_v33 }
 0x5a9   : > { %v1079_v34 = vpop.trf.xlu2 }
 0x5aa   : > { %1127 = vst.msk [vmem:[%s1809_s4 + $0x18] sm:$0xff] %vm227_vm0, %v1079_v34 }
 0x5ad   : > { %v1110_v35 = vpop.trf.xlu1 }
 0x5ae   : > { %1142 = vst.msk [vmem:[%s1809_s4 + $0x90] sm:$0xff] %vm227_vm0, %v1110_v35 }
 0x5b1   : > { %v1080_v36 = vpop.trf.xlu2 }
 0x5b2   : > { %1128 = vst.msk [vmem:[%s1809_s4 + $0x20] sm:$0xff] %vm227_vm0, %v1080_v36 }
 0x5b5   : > { %v1111_v37 = vpop.trf.xlu1 }
 0x5b6   : > { %1143 = vst.msk [vmem:[%s1809_s4 + $0x98] sm:$0xff] %vm227_vm0, %v1111_v37 }
 0x5b9   : > { %v1081_v38 = vpop.trf.xlu2 }
 0x5ba   : > { %1129 = vst.msk [vmem:[%s1809_s4 + $0x28] sm:$0xff] %vm227_vm0, %v1081_v38 }
 0x5bd   : > { %v1112_v39 = vpop.trf.xlu1 }
 0x5be   : > { %1144 = vst.msk [vmem:[%s1809_s4 + $0xa0] sm:$0xff] %vm227_vm0, %v1112_v39 }
 0x5c1   : > { %v1082_v40 = vpop.trf.xlu2 }
 0x5c2   : > { %1130 = vst.msk [vmem:[%s1809_s4 + $0x30] sm:$0xff] %vm227_vm0, %v1082_v40 }
 0x5c5   : > { %v1113_v41 = vpop.trf.xlu1 }
 0x5c6   : > { %1145 = vst.msk [vmem:[%s1809_s4 + $0xa8] sm:$0xff] %vm227_vm0, %v1113_v41 }
 0x5c9   : > { %v1083_v42 = vpop.trf.xlu2 }
 0x5ca   : > { %1131 = vst.msk [vmem:[%s1809_s4 + $0x38] sm:$0xff] %vm227_vm0, %v1083_v42 }
 0x5cd   : > { %v1114_v43 = vpop.trf.xlu1 }
 0x5ce   : > { %1146 = vst.msk [vmem:[%s1809_s4 + $0xb0] sm:$0xff] %vm227_vm0, %v1114_v43 }
 0x5d1   : > { %v1084_v44 = vpop.trf.xlu2 }
 0x5d2   : > { %1132 = vst.msk [vmem:[%s1809_s4 + $0x40] sm:$0xff] %vm227_vm0, %v1084_v44 }
 0x5d5   : > { %v1115_v45 = vpop.trf.xlu1 }
 0x5d6   : > { %1147 = vst.msk [vmem:[%s1809_s4 + $0xb8] sm:$0xff] %vm227_vm0, %v1115_v45 }
 0x5d9   : > { %v1085_v46 = vpop.trf.xlu2 }
 0x5da   : > { %1133 = vst.msk [vmem:[%s1809_s4 + $0x48] sm:$0xff] %vm227_vm0, %v1085_v46 }
 0x5dd   : > { %v1116_v48 = vpop.trf.xlu1 }
 0x5de   : > { %1148 = vst.msk [vmem:[%s1809_s4 + $0xc0] sm:$0xff] %vm227_vm0, %v1116_v48 }
 0x5e1   : > { %v1086_v47 = vpop.trf.xlu2 }
 0x5e2   : > { %1134 = vst.msk [vmem:[%s1809_s4 + $0x50] sm:$0xff] %vm227_vm0, %v1086_v47 }
 0x5e5   : > { %v1117_v49 = vpop.trf.xlu1 }
 0x5e6   : > { %1149 = vst.msk [vmem:[%s1809_s4 + $0xc8] sm:$0xff] %vm227_vm0, %v1117_v49 }
 0x5e9   : > { %v1087_v50 = vpop.trf.xlu2 }
 0x5ea   : > { %1135 = vst.msk [vmem:[%s1809_s4 + $0x58] sm:$0xff] %vm227_vm0, %v1087_v50 }
 0x5ed   : > { %v1118_v51 = vpop.trf.xlu1 }
 0x5ee   : > { %1150 = vst.msk [vmem:[%s1809_s4 + $0xd0] sm:$0xff] %vm227_vm0, %v1118_v51 }
 0x5f1   : > { %v1088_v52 = vpop.trf.xlu2 }
 0x5f2   : > { %1136 = vst.msk [vmem:[%s1809_s4 + $0x60] sm:$0xff] %vm227_vm0, %v1088_v52 }
 0x5f5   : > { %v1119_v53 = vpop.trf.xlu1 }
 0x5f6   : > { %1151 = vst.msk [vmem:[%s1809_s4 + $0xd8] sm:$0xff] %vm227_vm0, %v1119_v53 }
 0x5f9   : > { %v1089_v54 = vpop.trf.xlu2 }
 0x5fa   : > { %1137 = vst.msk [vmem:[%s1809_s4 + $0x68] sm:$0xff] %vm227_vm0, %v1089_v54 }
 0x5fd   : > { %v1120_v55 = vpop.trf.xlu1 }
 0x5fe   : > { %1152 = vst.msk [vmem:[%s1809_s4 + $0xe0] sm:$0xff] %vm227_vm0, %v1120_v55 }
 0x601   : > { %v1090_v56 = vpop.trf.xlu2 }
 0x602   : > { %1138 = vst.msk [vmem:[%s1809_s4 + $0x70] sm:$0xff] %vm227_vm0, %v1090_v56 }
 0x605   : > { %v1121_v57 = vpop.trf.xlu1 }
 0x606   : > { %1153 = vst.msk [vmem:[%s1809_s4 + $0xe8] sm:$0xff] %vm227_vm0, %v1121_v57 }
 0x609   : > { %v1091_v58 = vpop.trf.xlu2 }
 0x60a   : > { %1139 = vst.msk [vmem:[%s1809_s4 + $0x78] sm:$0xff] %vm227_vm0, %v1091_v58 }
 0x60d   : > { %v1122_v59 = vpop.trf.xlu1 }
 0x60e   : > { %1154 = vst.msk [vmem:[%s1809_s4 + $0xf0] sm:$0xff] %vm227_vm0, %v1122_v59 }
 0x615   : > { %v1123_v60 = vpop.trf.xlu1 }
 0x616   : > { %1155 = vst.msk [vmem:[%s1809_s4 + $0xf8] sm:$0xff] %vm227_vm0, %v1123_v60 }
 0x617 PF: > { %s12_s9 = sadd.s32 1, %s1479_s9  }
 0x618   : > { %p9_p4 = scmp.ge.s32.totalorder %s12_s9, 4  }
 0x61a   :  { %11 = sbr.rel (!%p9_p4) target bundleno = 1 (0x1), region = 58 }

</bundles_post_ra>
